<compile_context>
chip_gen: v5e
topology: v5e:2x2
jax: 0.10.0
libtpu: 0.0.40
codegen_flags: <defaults>
</compile_context>

<pallas_src>
import functools

import jax
import jax.numpy as jnp
from jax import lax
from jax.experimental import pallas as pl
from jax.experimental.pallas import tpu as pltpu

_EPS = 1e-6
_LANE = 128
_SUB = 8
_SLAB = _SUB * _LANE          # 1024: element granularity handled by the kernel
_MAX_TILE_ROWS = 2048         # (2048, 128) f32 block = 1 MiB per input per buffer
_MIN_TILE_ROWS = 256


def _dbsn_loss_kernel(t_ref, mu_ref, smu_ref, sn_ref, sy_ref,
                      sum_ref, max1_ref, max3_ref,
                      *, rows, tile_rows, inner_steps, total_blocks, needs_mask):
    c = pl.program_id(0)      # split axis ("parallel"; dual-TC on v7x)
    i = pl.program_id(1)      # streaming axis ("arbitrary"; reduction)

    # Per-split resident accumulators live directly in the (8, 128) output
    # blocks (out index_map depends only on c).  Init at the first inner step.
    @pl.when(i == 0)
    def _init():
        sum_ref[...] = jnp.zeros_like(sum_ref)
        max1_ref[...] = jnp.full_like(max1_ref, -jnp.inf)
        max3_ref[...] = jnp.full_like(max3_ref, -jnp.inf)

    t = t_ref[...]
    mu = mu_ref[...]
    smu = smu_ref[...]
    sn = jnp.maximum(sn_ref[...], _EPS)           # clamp(min=eps)
    sy = sy_ref[...]

    d = t - mu
    inv_sn = pl.reciprocal(sn, approx=False)      # EUP slot; exact for numerics
    inv_sy = pl.reciprocal(sy, approx=False)
    t1 = d * d * inv_sy
    t2 = jnp.log(sn)
    t3 = smu * inv_sn
    s = t1 + t2 + t3

    r8 = tile_rows // _SUB

    def _accumulate(s_v, t1_v, t3_v):
        # Reduce the tile down to one vreg: pure VPU adds/maxes across the
        # leading (non-vreg) axis, then a single RMW of the (8, 128) output.
        s3 = s_v.reshape(r8, _SUB, _LANE)
        t13 = t1_v.reshape(r8, _SUB, _LANE)
        t33 = t3_v.reshape(r8, _SUB, _LANE)
        sum_ref[...] += jnp.sum(s3, axis=0)
        max1_ref[...] = jnp.maximum(max1_ref[...], jnp.max(t13, axis=0))
        max3_ref[...] = jnp.maximum(max3_ref[...], jnp.max(t33, axis=0))

    if needs_mask:
        g = c * inner_steps + i                   # global block index (static math)
        is_tail = g == total_blocks - 1

        @pl.when(is_tail)
        def _tail_step():
            # Only the very last block is partial; mask by row index (rows is
            # always a multiple of 8, so masking is whole-vreg granular).
            row = lax.broadcasted_iota(jnp.int32, (tile_rows, _LANE), 0)
            valid = (g * tile_rows + row) < rows
            _accumulate(jnp.where(valid, s, 0.0),
                        jnp.where(valid, t1, -jnp.inf),
                        jnp.where(valid, t3, -jnp.inf))

        @pl.when(jnp.logical_not(is_tail))
        def _body_step():
            _accumulate(s, t1, t3)
    else:
        _accumulate(s, t1, t3)


def _jnp_stats(t, mu, smu, sn, sy):
    """Plain-jnp stats for the (<1024-element) ragged tail."""
    sn = jnp.maximum(sn, _EPS)
    t1 = (t - mu) ** 2 / sy
    t3 = smu / sn
    s = t1 + jnp.log(sn) + t3
    return jnp.sum(s), jnp.max(t1), jnp.max(t3)


def _pick_tile(rows):
    """Largest multiple-of-8 tile (<= _MAX_TILE_ROWS) dividing rows, else mask."""
    if rows <= _MAX_TILE_ROWS:
        return rows, 1, False
    for t in range(_MAX_TILE_ROWS, _MIN_TILE_ROWS - 1, -_SUB):
        if rows % t == 0:
            return t, rows // t, False
    grid_len = -(-rows // _MAX_TILE_ROWS)
    return _MAX_TILE_ROWS, grid_len, True


@jax.jit
def dbsn_loss(target, mu, sigma_mu, sigma_n, sigma_y):
    flats = [jnp.asarray(x, jnp.float32).reshape(-1)
             for x in (target, mu, sigma_mu, sigma_n, sigma_y)]
    n = flats[0].size                         # static under jit
    n_main = (n // _SLAB) * _SLAB             # aligned prefix handled by kernel

    total = jnp.float32(0.0)
    m1 = jnp.float32(-jnp.inf)
    m3 = jnp.float32(-jnp.inf)

    if n_main > 0:
        rows = n_main // _LANE                # always a multiple of 8
        mains = [f if n_main == n else f[:n_main] for f in flats]
        mains = [f.reshape(rows, _LANE) for f in mains]

        tile_rows, grid_len, needs_mask = _pick_tile(rows)
        # Two-way split on a leading "parallel" axis: per-split partial stats
        # (dual TensorCore on v7x; harmless sequential sweep on v5e/v6e).
        num_splits = 2 if (grid_len >= 2 and grid_len % 2 == 0) else 1
        inner_steps = grid_len // num_splits

        kernel = functools.partial(
            _dbsn_loss_kernel, rows=rows, tile_rows=tile_rows,
            inner_steps=inner_steps, total_blocks=grid_len,
            needs_mask=needs_mask)

        in_spec = pl.BlockSpec((tile_rows, _LANE),
                               lambda c, i: (c * inner_steps + i, 0))
        out_spec = pl.BlockSpec((_SUB, _LANE), lambda c, i: (c, 0))
        out_sds = jax.ShapeDtypeStruct((num_splits * _SUB, _LANE), jnp.float32)

        sum_p, max1_p, max3_p = pl.pallas_call(
            kernel,
            out_shape=(out_sds, out_sds, out_sds),
            grid_spec=pltpu.PrefetchScalarGridSpec(
                num_scalar_prefetch=0,
                grid=(num_splits, inner_steps),
                in_specs=[in_spec] * 5,
                out_specs=(out_spec, out_spec, out_spec),
            ),
            compiler_params=pltpu.CompilerParams(
                dimension_semantics=("parallel", "arbitrary"),
                vmem_limit_bytes=32 * 1024 * 1024),
        )(*mains)

        total = total + jnp.sum(sum_p)
        m1 = jnp.maximum(m1, jnp.max(max1_p))
        m3 = jnp.maximum(m3, jnp.max(max3_p))

    if n_main < n:
        # Ragged tail (<1024 elements) handled with plain jnp — no full-tensor pad.
        # TODO(synk): zero-copy (manual-DMA) prefix for n % 128 != 0 inputs.
        tails = [f[n_main:] for f in flats]
        tsum, tm1, tm3 = _jnp_stats(*tails)
        total = total + tsum
        m1 = jnp.maximum(m1, tm1)
        m3 = jnp.maximum(m3, tm3)

    loss = total / jnp.float32(n)
    overflow = jnp.logical_or(m1 > 1e8, m3 > 1e8)
    return jnp.where(overflow, jnp.float32(0.0), loss)


def _reference(target, mu, sigma_mu, sigma_n, sigma_y):
    eps = 1e-6
    sn = jnp.maximum(sigma_n.astype(jnp.float32), eps)
    t1 = (target - mu) ** 2 / sigma_y
    t2 = jnp.log(sn)
    t3 = sigma_mu / sn
    loss = jnp.mean(t1 + t2 + t3)
    bad = jnp.logical_or(jnp.max(t1) > 1e8, jnp.max(t3) > 1e8)
    return jnp.where(bad, 0.0, loss)


if __name__ == "__main__":
    key = jax.random.PRNGKey(0)

    def make_inputs(k, shape):
        k1, k2, k3, k4, k5 = jax.random.split(k, 5)
        target = jax.random.normal(k1, shape, jnp.float32)
        mu = jax.random.normal(k2, shape, jnp.float32)
        # sigmas are variance-like positive quantities in DBSN
        sigma_mu = jnp.abs(jax.random.normal(k3, shape, jnp.float32)) + 0.1
        sigma_n = jnp.abs(jax.random.normal(k4, shape, jnp.float32)) + 0.1
        sigma_y = jnp.abs(jax.random.normal(k5, shape, jnp.float32)) + 0.1
        return target, mu, sigma_mu, sigma_n, sigma_y

    def check(args, rtol=1e-4, atol=1e-5):
        out = jax.block_until_ready(dbsn_loss(*args))
        ref = _reference(*args)
        assert jnp.allclose(out, ref, rtol=rtol, atol=atol), (out, ref)
        return out

    keys = jax.random.split(key, 4)

    # A: small NCHW shape, single full-extent block, no mask, no tail.
    args_a = make_inputs(keys[0], (2, 4, 16, 16))
    check(args_a)

    # B: 1024x1024 image -> rows=8192, tile=2048, grid (2, 2): two-way
    # "parallel" split with two streaming (accumulation) steps per split.
    args_b = make_inputs(keys[1], (1, 1, 1024, 1024))
    check(args_b)

    # C: ragged element count (1517) -> 1024-element kernel prefix + jnp tail.
    args_c = make_inputs(keys[2], (1, 1, 37, 41))
    check(args_c)

    # D: rows=2056 (no usable divisor) -> masked partial final block path.
    args_d = make_inputs(keys[3], (2056 * 128,))
    check(args_d)

    # E: overflow guard (t1.max() > 1e8 -> loss forced to 0).
    t, m, smu, sn, sy = args_a
    t = t.at[0, 0, 0, 0].set(5.0)
    m = m.at[0, 0, 0, 0].set(-5.0)
    sy = sy.at[0, 0, 0, 0].set(1e-12)
    out_e = check((t, m, smu, sn, sy), rtol=1e-5, atol=1e-6)
    assert float(out_e) == 0.0

    print("KERNEL_OK")
</pallas_src>

<mosaic_0001>
module attributes {stable_mosaic.version = 11 : i64} {
  func.func @_dbsn_loss_kernel(%arg0: i32, %arg1: i32, %arg2: memref<16x128xf32, #tpu.memory_space<vmem>>, %arg3: memref<16x128xf32, #tpu.memory_space<vmem>>, %arg4: memref<16x128xf32, #tpu.memory_space<vmem>>, %arg5: memref<16x128xf32, #tpu.memory_space<vmem>>, %arg6: memref<16x128xf32, #tpu.memory_space<vmem>>, %arg7: memref<8x128xf32, #tpu.memory_space<vmem>>, %arg8: memref<8x128xf32, #tpu.memory_space<vmem>>, %arg9: memref<8x128xf32, #tpu.memory_space<vmem>>) attributes {dimension_semantics = [#tpu.dimension_semantics<parallel>, #tpu.dimension_semantics<arbitrary>], iteration_bounds = array<i64: 1, 1>, scalar_prefetch = 0 : i64, scratch_operands = 0 : i64, tpu.core_type = #tpu.core_type<tc>, window_params = [{transform_indices = @transform_0, window_bounds = array<i64: 16, 128>}, {transform_indices = @transform_1, window_bounds = array<i64: 16, 128>}, {transform_indices = @transform_2, window_bounds = array<i64: 16, 128>}, {transform_indices = @transform_3, window_bounds = array<i64: 16, 128>}, {transform_indices = @transform_4, window_bounds = array<i64: 16, 128>}, {transform_indices = @transform_5, window_bounds = array<i64: 8, 128>}, {transform_indices = @transform_6, window_bounds = array<i64: 8, 128>}, {transform_indices = @transform_7, window_bounds = array<i64: 8, 128>}]} {
    %c0_i32 = arith.constant 0 : i32
    %0 = arith.cmpi eq, %arg1, %c0_i32 : i32
    %1 = arith.extui %0 : i1 to i32
    %c0_i32_0 = arith.constant 0 : i32
    %2 = arith.cmpi ne, %1, %c0_i32_0 : i32
    scf.if %2 {
      %cst_25 = arith.constant 0.000000e+00 : f32
      %34 = vector.broadcast %cst_25 : f32 to vector<8x128xf32>
      %c0_26 = arith.constant 0 : index
      %c0_27 = arith.constant 0 : index
      %35 = vector.load %arg7[%c0_26, %c0_27] : memref<8x128xf32, #tpu.memory_space<vmem>>, vector<8x128xf32>
      tpu.vector_store %arg7[%c0_26, %c0_27], %34 {strides = array<i32>} : memref<8x128xf32, #tpu.memory_space<vmem>>, vector<8x128xf32>,
      %cst_28 = arith.constant 0xFF800000 : f32
      %36 = vector.broadcast %cst_28 : f32 to vector<8x128xf32>
      %c0_29 = arith.constant 0 : index
      %c0_30 = arith.constant 0 : index
      %37 = vector.load %arg8[%c0_29, %c0_30] : memref<8x128xf32, #tpu.memory_space<vmem>>, vector<8x128xf32>
      tpu.vector_store %arg8[%c0_29, %c0_30], %36 {strides = array<i32>} : memref<8x128xf32, #tpu.memory_space<vmem>>, vector<8x128xf32>,
      %cst_31 = arith.constant 0xFF800000 : f32
      %38 = vector.broadcast %cst_31 : f32 to vector<8x128xf32>
      %c0_32 = arith.constant 0 : index
      %c0_33 = arith.constant 0 : index
      %39 = vector.load %arg9[%c0_32, %c0_33] : memref<8x128xf32, #tpu.memory_space<vmem>>, vector<8x128xf32>
      tpu.vector_store %arg9[%c0_32, %c0_33], %38 {strides = array<i32>} : memref<8x128xf32, #tpu.memory_space<vmem>>, vector<8x128xf32>,
    } else {
    }
    %c0 = arith.constant 0 : index
    %c0_1 = arith.constant 0 : index
    %3 = vector.load %arg2[%c0, %c0_1] : memref<16x128xf32, #tpu.memory_space<vmem>>, vector<16x128xf32>
    %c0_2 = arith.constant 0 : index
    %c0_3 = arith.constant 0 : index
    %4 = vector.load %arg3[%c0_2, %c0_3] : memref<16x128xf32, #tpu.memory_space<vmem>>, vector<16x128xf32>
    %c0_4 = arith.constant 0 : index
    %c0_5 = arith.constant 0 : index
    %5 = vector.load %arg4[%c0_4, %c0_5] : memref<16x128xf32, #tpu.memory_space<vmem>>, vector<16x128xf32>
    %c0_6 = arith.constant 0 : index
    %c0_7 = arith.constant 0 : index
    %6 = vector.load %arg5[%c0_6, %c0_7] : memref<16x128xf32, #tpu.memory_space<vmem>>, vector<16x128xf32>
    %cst = arith.constant 9.99999997E-7 : f32
    %7 = vector.broadcast %cst : f32 to vector<16x128xf32>
    %8 = arith.maximumf %6, %7 : vector<16x128xf32>
    %c0_8 = arith.constant 0 : index
    %c0_9 = arith.constant 0 : index
    %9 = vector.load %arg6[%c0_8, %c0_9] : memref<16x128xf32, #tpu.memory_space<vmem>>, vector<16x128xf32>
    %10 = arith.subf %3, %4 : vector<16x128xf32>
    %11 = tpu.reciprocal %8 : vector<16x128xf32> -> vector<16x128xf32>
    %12 = tpu.reciprocal %9 : vector<16x128xf32> -> vector<16x128xf32>
    %13 = arith.mulf %10, %10 : vector<16x128xf32>
    %14 = arith.mulf %13, %12 : vector<16x128xf32>
    %15 = math.log %8 : vector<16x128xf32>
    %16 = arith.mulf %5, %11 : vector<16x128xf32>
    %17 = arith.addf %14, %15 : vector<16x128xf32>
    %18 = arith.addf %17, %16 : vector<16x128xf32>
    %19 = vector.shape_cast %18 : vector<16x128xf32> to vector<2x8x128xf32>
    %20 = vector.shape_cast %14 : vector<16x128xf32> to vector<2x8x128xf32>
    %21 = vector.shape_cast %16 : vector<16x128xf32> to vector<2x8x128xf32>
    %c0_10 = arith.constant 0 : index
    %c0_11 = arith.constant 0 : index
    %22 = vector.load %arg7[%c0_10, %c0_11] : memref<8x128xf32, #tpu.memory_space<vmem>>, vector<8x128xf32>
    %cst_12 = arith.constant dense<0.000000e+00> : vector<8x128xf32>
    %23 = vector.multi_reduction <add>, %19, %cst_12 [0] : vector<2x8x128xf32> to vector<8x128xf32>
    %24 = arith.addf %22, %23 : vector<8x128xf32>
    %c0_13 = arith.constant 0 : index
    %c0_14 = arith.constant 0 : index
    %25 = vector.load %arg7[%c0_13, %c0_14] : memref<8x128xf32, #tpu.memory_space<vmem>>, vector<8x128xf32>
    tpu.vector_store %arg7[%c0_13, %c0_14], %24 {strides = array<i32>} : memref<8x128xf32, #tpu.memory_space<vmem>>, vector<8x128xf32>,
    %c0_15 = arith.constant 0 : index
    %c0_16 = arith.constant 0 : index
    %26 = vector.load %arg8[%c0_15, %c0_16] : memref<8x128xf32, #tpu.memory_space<vmem>>, vector<8x128xf32>
    %cst_17 = arith.constant dense<0xFF800000> : vector<8x128xf32>
    %27 = vector.multi_reduction <maximumf>, %20, %cst_17 [0] : vector<2x8x128xf32> to vector<8x128xf32>
    %28 = arith.maximumf %26, %27 : vector<8x128xf32>
    %c0_18 = arith.constant 0 : index
    %c0_19 = arith.constant 0 : index
    %29 = vector.load %arg8[%c0_18, %c0_19] : memref<8x128xf32, #tpu.memory_space<vmem>>, vector<8x128xf32>
    tpu.vector_store %arg8[%c0_18, %c0_19], %28 {strides = array<i32>} : memref<8x128xf32, #tpu.memory_space<vmem>>, vector<8x128xf32>,
    %c0_20 = arith.constant 0 : index
    %c0_21 = arith.constant 0 : index
    %30 = vector.load %arg9[%c0_20, %c0_21] : memref<8x128xf32, #tpu.memory_space<vmem>>, vector<8x128xf32>
    %cst_22 = arith.constant dense<0xFF800000> : vector<8x128xf32>
    %31 = vector.multi_reduction <maximumf>, %21, %cst_22 [0] : vector<2x8x128xf32> to vector<8x128xf32>
    %32 = arith.maximumf %30, %31 : vector<8x128xf32>
    %c0_23 = arith.constant 0 : index
    %c0_24 = arith.constant 0 : index
    %33 = vector.load %arg9[%c0_23, %c0_24] : memref<8x128xf32, #tpu.memory_space<vmem>>, vector<8x128xf32>
    tpu.vector_store %arg9[%c0_23, %c0_24], %32 {strides = array<i32>} : memref<8x128xf32, #tpu.memory_space<vmem>>, vector<8x128xf32>,
    return
  }
  func.func @transform_0(%arg0: i32, %arg1: i32) -> (i32, i32) {
    %c1_i32 = arith.constant 1 : i32
    %0 = arith.muli %arg0, %c1_i32 : i32
    %1 = arith.addi %0, %arg1 : i32
    %c0_i32 = arith.constant 0 : i32
    %c0_i32_0 = arith.constant 0 : i32
    return %1, %c0_i32 : i32, i32
  }
  func.func @transform_1(%arg0: i32, %arg1: i32) -> (i32, i32) {
    %c1_i32 = arith.constant 1 : i32
    %0 = arith.muli %arg0, %c1_i32 : i32
    %1 = arith.addi %0, %arg1 : i32
    %c0_i32 = arith.constant 0 : i32
    %c0_i32_0 = arith.constant 0 : i32
    return %1, %c0_i32 : i32, i32
  }
  func.func @transform_2(%arg0: i32, %arg1: i32) -> (i32, i32) {
    %c1_i32 = arith.constant 1 : i32
    %0 = arith.muli %arg0, %c1_i32 : i32
    %1 = arith.addi %0, %arg1 : i32
    %c0_i32 = arith.constant 0 : i32
    %c0_i32_0 = arith.constant 0 : i32
    return %1, %c0_i32 : i32, i32
  }
  func.func @transform_3(%arg0: i32, %arg1: i32) -> (i32, i32) {
    %c1_i32 = arith.constant 1 : i32
    %0 = arith.muli %arg0, %c1_i32 : i32
    %1 = arith.addi %0, %arg1 : i32
    %c0_i32 = arith.constant 0 : i32
    %c0_i32_0 = arith.constant 0 : i32
    return %1, %c0_i32 : i32, i32
  }
  func.func @transform_4(%arg0: i32, %arg1: i32) -> (i32, i32) {
    %c1_i32 = arith.constant 1 : i32
    %0 = arith.muli %arg0, %c1_i32 : i32
    %1 = arith.addi %0, %arg1 : i32
    %c0_i32 = arith.constant 0 : i32
    %c0_i32_0 = arith.constant 0 : i32
    return %1, %c0_i32 : i32, i32
  }
  func.func @transform_5(%arg0: i32, %arg1: i32) -> (i32, i32) {
    %c0_i32 = arith.constant 0 : i32
    %c0_i32_0 = arith.constant 0 : i32
    return %arg0, %c0_i32 : i32, i32
  }
  func.func @transform_6(%arg0: i32, %arg1: i32) -> (i32, i32) {
    %c0_i32 = arith.constant 0 : i32
    %c0_i32_0 = arith.constant 0 : i32
    return %arg0, %c0_i32 : i32, i32
  }
  func.func @transform_7(%arg0: i32, %arg1: i32) -> (i32, i32) {
    %c0_i32 = arith.constant 0 : i32
    %c0_i32_0 = arith.constant 0 : i32
    return %arg0, %c0_i32 : i32, i32
  }
}

</mosaic_0001>

<bundles_post_ra>
// kernel: dbsn_loss.1
= control target key start
LH: loop header
LB: loop body
LE: loop exit
PB: predicated region body
PF: predicated region fallthrough
CT: control target
= control target key end

     0   :  { %s429_s3 = inlined_call_operand.vmem [shape: f32[16,128], index: 3, kind: input, shape index: {}]   ;;  %s430_s4 = inlined_call_operand.vmem [shape: f32[16,128], index: 4, kind: input, shape index: {}]   ;;  %s431_s0 = inlined_call_operand.vmem [shape: f32[16,128], index: 0, kind: input, shape index: {}]   ;;  %s432_s1 = inlined_call_operand.vmem [shape: f32[16,128], index: 1, kind: input, shape index: {}]   ;;  %s433_s2 = inlined_call_operand.vmem [shape: f32[16,128], index: 2, kind: input, shape index: {}]   ;;  %s434_s6 = inlined_call_operand.vmem [shape: f32[8,128], index: 6, kind: output, shape index: {1}]   ;;  %s435_s7 = inlined_call_operand.vmem [shape: f32[8,128], index: 7, kind: output, shape index: {2}]   ;;  %s436_s5 = inlined_call_operand.vmem [shape: f32[8,128], index: 5, kind: output, shape index: {0}]  }
   0x1   :  { %v146_v0 = vld [vmem:[%s429_s3] sm:$0xff]  ;;  %v147_v1 = vld [vmem:[%s429_s3 + $0x8] sm:$0xff] }
   0x2   :  { %v150_v2 = vld [vmem:[%s430_s4] sm:$0xff]  ;;  %v148_v3 = vmax.f32 %v146_v0, 1e-06  ;;  %v341_v4 = vmax.f32 %v147_v1, 1e-06  ;;  %v151_v5 = vld [vmem:[%s430_s4 + $0x8] sm:$0xff] }
   0x3   :  { %280 = vrcp.f32 %v150_v2  ;;  %v140_v6 = vld [vmem:[%s431_s0] sm:$0xff]  ;;  %v141_v7 = vld [vmem:[%s431_s0 + $0x8] sm:$0xff]  ;;  %v191_v12 = vand.u32 2147483647, %v150_v2  ;;  %vm187_vm0 = vweird.f32 %v150_v2  ;;  %v193_v15 = vand.u32 2147483648, %v150_v2 }
   0x4   :  { %282 = vrcp.f32 %v151_v5  ;;  %v142_v8 = vld [vmem:[%s432_s1] sm:$0xff]  ;;  %v143_v9 = vld [vmem:[%s432_s1 + $0x8] sm:$0xff]  ;;  %v163_v10 = vand.u32 2147483647, %v148_v3  ;;  %v165_v11 = vand.u32 2147483648, %v148_v3  ;;  %vm159_vm1 = vweird.f32 %v148_v3 }
   0x5   :  { %284 = vrcp.f32 %v148_v3  ;;  %v152_v13 = vsub.f32 %v140_v6, %v142_v8  ;;  %v153_v14 = vsub.f32 %v141_v7, %v143_v9  ;;  %vm173_vm2 = vweird.f32 %v341_v4  ;;  %v144_v56 = vld [vmem:[%s433_s2] sm:$0xff]  ;;  %v145_v61 = vld [vmem:[%s433_s2 + $0x8] sm:$0xff] }
   0x6   :  { %286 = vrcp.f32 %v341_v4  ;;  %vm201_vm3 = vweird.f32 %v151_v5  ;;  %vm360_vm4 = vcmp.eq.f32.partialorder %v163_v10, 8.507059e+37  ;;  %v177_v19 = vand.u32 2147483647, %v341_v4 }
   0x7   :  { %288 = vlog2.f32 %v148_v3  ;;  %v179_v20 = vand.u32 2147483648, %v341_v4  ;;  %v166_v23 = vor.u32 1.1754944e-38, %v165_v11  ;;  %vm366_vm5 = vcmp.eq.f32.partialorder %v191_v12, 8.507059e+37 }
   0x8   :  { %290 = vlog2.f32 %v341_v4  ;;  %v207_v29 = vand.u32 2147483648, %v151_v5  ;;  %v205_v32 = vand.u32 2147483647, %v151_v5  ;;  %v194_v35 = vor.u32 1.1754944e-38, %v193_v15 }
   0x9   :  { %v281_v16 = vpop.eup %280  ;;  %vm372_vm10 = vcmp.eq.f32.partialorder %v177_v19, 8.507059e+37  ;;  %v210_v45 = vmul.f32 %v152_v13, %v152_v13  ;;  %v211_v50 = vmul.f32 %v153_v14, %v153_v14  ;;  %v180_v53 = vor.u32 1.1754944e-38, %v179_v20 }
   0xa   :  { %v283_v17 = vpop.eup %282  ;;  %v183_v21 = vmul.f32 %v281_v16, %v150_v2  ;;  %vm188_vm6 = vweird.f32 %v281_v16  ;;  %v208_v44 = vor.u32 1.1754944e-38, %v207_v29  ;;  %vm206_vm14 = vcmp.eq.f32.partialorder %v205_v32, 8.507059e+37 }
   0xb   :  { %v285_v22 = vpop.eup %284  ;;  %v197_v25 = vmul.f32 %v283_v17, %v151_v5  ;;  %vm202_vm7 = vweird.f32 %v283_v17  ;;  %vm377_vm11 = vmor %vm187_vm0, %vm188_vm6 }
   0xc   :  { %v287_v26 = vpop.eup %286  ;;  %v155_v27 = vmul.f32 %v285_v22, %v148_v3  ;;  %v184_v28 = vsub.f32 1.0, %v183_v21  ;;  %vm160_vm8 = vweird.f32 %v285_v22  ;;  %vm383_vm12 = vmor %vm201_vm3, %vm202_vm7 }
   0xd   :  { %v169_v30 = vmul.f32 %v287_v26, %v341_v4  ;;  %v198_v31 = vsub.f32 1.0, %v197_v25  ;;  %v289_v36 = vpop.eup %288  ;;  %vm174_vm9 = vweird.f32 %v287_v26  ;;  %vm389_vm13 = vmor %vm159_vm1, %vm160_vm8 }
   0xe   :  { %v156_v33 = vsub.f32 1.0, %v155_v27  ;;  %v185_v34 = vmul.f32 %v281_v16, %v184_v28  ;;  %v291_v46 = vpop.eup %290  ;;  %vm396_vm15 = vmor %vm173_vm2, %vm174_vm9  ;;  %v215_v55 = vmul.f32 0.6931472, %v289_v36 }
   0xf   :  { %v170_v37 = vsub.f32 1.0, %v169_v30  ;;  %v199_v40 = vmul.f32 %v283_v17, %v198_v31  ;;  %v217_v60 = vmul.f32 0.6931472, %v291_v46 }
  0x10   :  { %v157_v41 = vmul.f32 %v285_v22, %v156_v33  ;;  %v186_v42 = vadd.f32 %v281_v16, %v185_v34 }
  0x11   :  { %v171_v48 = vmul.f32 %v287_v26, %v170_v37  ;;  %v200_v49 = vadd.f32 %v283_v17, %v199_v40 }
  0x12   :  { %v158_v51 = vadd.f32 %v285_v22, %v157_v41  ;;  %v190_v54 = vsel %vm377_vm11, %v281_v16, %v186_v42 }
  0x13   :  { %v172_v57 = vadd.f32 %v287_v26, %v171_v48  ;;  %v195_v58 = vsel %vm366_vm5, %v194_v35, %v190_v54  ;;  %v204_v59 = vsel %vm383_vm12, %v283_v17, %v200_v49 }
  0x14   :  { %v162_v62 = vsel %vm389_vm13, %v285_v22, %v158_v51  ;;  %v209_v63 = vsel %vm206_vm14, %v208_v44, %v204_v59  ;;  %v212_v0 = vmul.f32 %v210_v45, %v195_v58 }
  0x15   :  { %v167_v1 = vsel %vm360_vm4, %v166_v23, %v162_v62  ;;  %v176_v2 = vsel %vm396_vm15, %v287_v26, %v172_v57  ;;  %v213_v3 = vmul.f32 %v211_v50, %v209_v63 }
  0x16   :  { %v181_v4 = vsel %vm372_vm10, %v180_v53, %v176_v2  ;;  %v218_v5 = vmul.f32 %v167_v1, %v144_v56  ;;  %v220_v6 = vadd.f32 %v215_v55, %v212_v0 }
  0x17   :  { %v219_v7 = vmul.f32 %v181_v4, %v145_v61  ;;  %v221_v8 = vadd.f32 %v217_v60, %v213_v3  ;;  %v229_v9 = vmax.f32 %v212_v0, %v213_v3 }
  0x18   :  { %v222_v10 = vadd.f32 %v220_v6, %v218_v5 }
  0x19   :  { %v223_v11 = vadd.f32 %v221_v8, %v219_v7  ;;  %v233_v12 = vmax.f32 %v218_v5, %v219_v7  ;;  %231 = vst [vmem:[%s434_s6] sm:$0xff] %v229_v9 }
  0x1b   :  { %v225_v13 = vadd.f32 %v223_v11, %v222_v10  ;;  %235 = vst [vmem:[%s435_s7] sm:$0xff] %v233_v12 }
  0x1d   :  { %227 = vst [vmem:[%s436_s5] sm:$0xff] %v225_v13 }

</bundles_post_ra>
